<compile_context>
chip_gen: v5e
topology: v5e:2x2
jax: 0.10.0
libtpu: 0.0.40
codegen_flags: <defaults>
</compile_context>

<pallas_src>
import functools
import math

import jax
import jax.numpy as jnp
from jax.experimental import pallas as pl
from jax.experimental.pallas import tpu as pltpu

# Problem sizes from the PyTorch module's test setup.
BATCH = 1
CTX_LEN = 5
X_LEN = 3
DIM = 6
NUM_HEADS = 2
HEAD_DIM = DIM // NUM_HEADS
OUT_PAD = 128      # lane-dense padded width for the output projection / store


def _cross_attn_kernel(act_ref, qkv_ref, o_ref, out_ref, *, lq, lk, d, nheads):
    """One batch element per grid step.

    act_ref : (1, lq+lk, d)     x rows [0:lq), context rows [lq:lq+lk)
    qkv_ref : (d+1, 3d)         rows [0:d) = Wqkv^T, row d = qkv bias
    o_ref   : (d+1, OUT_PAD)    rows [0:d) = Wo^T (zero-padded), row d = out bias (padded)
    out_ref : (1, lq, OUT_PAD)  columns [0:d) hold the result, remaining lanes are 0
    """
    hd = d // nheads

    a = act_ref[0].astype(jnp.float32)                 # (lq+lk, d)
    qkv_slab = qkv_ref[...].astype(jnp.float32)        # (d+1, 3d)
    o_slab = o_ref[...].astype(jnp.float32)            # (d+1, OUT_PAD)

    w_qkv = qkv_slab[:d, :]                            # (d, 3d)
    b_qkv = qkv_slab[d:d + 1, :]                       # (1, 3d)
    w_out = o_slab[:d, :]                              # (d, OUT_PAD)
    b_out = o_slab[d:d + 1, :]                         # (1, OUT_PAD)

    # Fused Q/K/V projection for both x and context rows in one MXU matmul.
    proj = jnp.dot(a, w_qkv, preferred_element_type=jnp.float32) + b_qkv   # (lq+lk, 3d)

    q = proj[:lq, 0:d]                                 # (lq, d)  from the x rows
    k = proj[lq:, d:2 * d]                             # (lk, d)  from the context rows
    v = proj[lq:, 2 * d:3 * d]                         # (lk, d)

    # Head handling without a per-head attention loop / lane concat:
    # stack per-head queries along the sublane axis with a static block-diagonal
    # mask.  Row h*lq + i of q_stack is query i restricted to head h's columns,
    # so a single matmul against the full K yields per-head scores and a single
    # softmax covers every (head, query) row.
    hl = nheads * lq
    rows = jax.lax.broadcasted_iota(jnp.int32, (hl, d), 0)
    cols = jax.lax.broadcasted_iota(jnp.int32, (hl, d), 1)
    head_mask = jnp.zeros((hl, d), dtype=jnp.float32)
    for h in range(nheads):   # static; just builds the compile-time block mask
        sel = ((rows >= h * lq) & (rows < (h + 1) * lq)
               & (cols >= h * hd) & (cols < (h + 1) * hd))
        head_mask = head_mask + sel.astype(jnp.float32)

    q_stack = jnp.concatenate([q] * nheads, axis=0) * head_mask            # (hl, d)

    scale = 1.0 / math.sqrt(hd)
    scores = jnp.einsum('qd,kd->qk', q_stack, k,
                        preferred_element_type=jnp.float32) * scale        # (hl, lk)

    # Numerically stable softmax over the context axis (per (head, query) row).
    scores = scores - jnp.max(scores, axis=-1, keepdims=True)
    e = jnp.exp(scores)
    attn = e / jnp.sum(e, axis=-1, keepdims=True)                          # (hl, lk)

    # Attention-weighted values; mask and fold the head blocks back to (lq, d).
    ctx_full = jnp.dot(attn, v, preferred_element_type=jnp.float32)        # (hl, d)
    ctx_masked = ctx_full * head_mask
    ctx = ctx_masked[0:lq, :]
    for h in range(1, nheads):   # static sum of sublane blocks (cheap VPU adds)
        ctx = ctx + ctx_masked[h * lq:(h + 1) * lq, :]                     # (lq, d)

    # Output projection straight into a lane-dense (lq, 128) slab (pad cols = 0).
    out = jnp.dot(ctx, w_out, preferred_element_type=jnp.float32) + b_out  # (lq, OUT_PAD)
    out_ref[0] = out.astype(out_ref.dtype)


@functools.partial(jax.jit, static_argnames=("num_heads",))
def cross_attention(x, context, qkv_w, qkv_b, out_w, out_b, *, num_heads):
    """Forward pass of OptimizedCrossAttention.

    x       : (B, Lq, D)
    context : (B, Lk, D)
    qkv_w   : (3D, D)   PyTorch nn.Linear layout (out_features, in_features)
    qkv_b   : (3D,)
    out_w   : (D, D)
    out_b   : (D,)
    """
    B, Lq, D = x.shape
    Lk = context.shape[1]
    L = Lq + Lk
    f32 = jnp.float32

    # ---- operand packing (tiny wrapper-side layout plumbing) ----
    acts = jnp.concatenate([x, context], axis=1).astype(f32)               # (B, L, D)
    qkv_slab = jnp.concatenate(
        [qkv_w.T.astype(f32), qkv_b.reshape(1, 3 * D).astype(f32)], axis=0)  # (D+1, 3D)
    wo_pad = jnp.pad(out_w.T.astype(f32), ((0, 0), (0, OUT_PAD - D)))        # (D, 128)
    bo_pad = jnp.pad(out_b.reshape(1, D).astype(f32), ((0, 0), (0, OUT_PAD - D)))
    o_slab = jnp.concatenate([wo_pad, bo_pad], axis=0)                       # (D+1, 128)

    grid_spec = pltpu.PrefetchScalarGridSpec(
        num_scalar_prefetch=0,
        grid=(B,),   # B=1 in the spec -> a single grid step
        in_specs=[
            pl.BlockSpec((1, L, D), lambda b: (b, 0, 0)),          # packed activations
            pl.BlockSpec((D + 1, 3 * D), lambda b: (0, 0)),        # qkv weight+bias slab
            pl.BlockSpec((D + 1, OUT_PAD), lambda b: (0, 0)),      # out-proj slab (padded)
        ],
        out_specs=pl.BlockSpec((1, Lq, OUT_PAD), lambda b: (b, 0, 0)),
    )

    flops_per_b = (2 * L * D * 3 * D                    # fused qkv projection
                   + 2 * (num_heads * Lq) * D * Lk      # scores
                   + 2 * (num_heads * Lq) * Lk * D      # attn @ v
                   + 2 * Lq * D * D)                    # output projection
    bytes_accessed = 4 * (B * L * D + (D + 1) * 3 * D + (D + 1) * OUT_PAD
                          + B * Lq * OUT_PAD)

    kernel = functools.partial(_cross_attn_kernel, lq=Lq, lk=Lk, d=D, nheads=num_heads)

    out_padded = pl.pallas_call(
        kernel,
        out_shape=jax.ShapeDtypeStruct((B, Lq, OUT_PAD), jnp.float32),
        grid_spec=grid_spec,
        compiler_params=pltpu.CompilerParams(
            dimension_semantics=("parallel",)),
        cost_estimate=pl.CostEstimate(
            flops=B * flops_per_b,
            transcendentals=B * num_heads * Lq * Lk,
            bytes_accessed=bytes_accessed),
    )(acts, qkv_slab, o_slab)

    return out_padded[..., :D].astype(x.dtype)


def reference(x, context, qkv_w, qkv_b, out_w, out_b, num_heads):
    """Pure-JAX reference mirroring the PyTorch forward pass exactly."""
    B, Lq, D = x.shape
    Lk = context.shape[1]
    hd = D // num_heads

    wq, wk, wv = qkv_w[:D], qkv_w[D:2 * D], qkv_w[2 * D:]
    bq, bk, bv = qkv_b[:D], qkv_b[D:2 * D], qkv_b[2 * D:]

    q = x @ wq.T + bq
    k = context @ wk.T + bk
    v = context @ wv.T + bv

    q = q.reshape(B, Lq, num_heads, hd).transpose(0, 2, 1, 3)
    k = k.reshape(B, Lk, num_heads, hd).transpose(0, 2, 1, 3)
    v = v.reshape(B, Lk, num_heads, hd).transpose(0, 2, 1, 3)

    scores = (q @ k.transpose(0, 1, 3, 2)) / math.sqrt(hd)
    attn = jax.nn.softmax(scores, axis=-1)
    ctx = (attn @ v).transpose(0, 2, 1, 3).reshape(B, Lq, D)
    return ctx @ out_w.T + out_b


if __name__ == "__main__":
    key = jax.random.PRNGKey(0)
    keys = jax.random.split(key, 6)

    # Inputs with the module's shapes.
    x = jax.random.normal(keys[0], (BATCH, X_LEN, DIM), dtype=jnp.float32)
    context = jax.random.normal(keys[1], (BATCH, CTX_LEN, DIM), dtype=jnp.float32)

    # Deterministic parameter init matching nn.Linear shapes.
    bound = 1.0 / math.sqrt(DIM)
    qkv_w = jax.random.uniform(keys[2], (3 * DIM, DIM), jnp.float32,
                               minval=-bound, maxval=bound)
    qkv_b = jax.random.uniform(keys[3], (3 * DIM,), jnp.float32,
                               minval=-bound, maxval=bound)
    out_w = jax.random.uniform(keys[4], (DIM, DIM), jnp.float32,
                               minval=-bound, maxval=bound)
    out_b = jax.random.uniform(keys[5], (DIM,), jnp.float32,
                               minval=-bound, maxval=bound)

    out = cross_attention(x, context, qkv_w, qkv_b, out_w, out_b,
                          num_heads=NUM_HEADS)
    out = jax.block_until_ready(out)

    ref = reference(x, context, qkv_w, qkv_b, out_w, out_b, NUM_HEADS)
    assert out.shape == (BATCH, X_LEN, DIM)
    max_err = jnp.max(jnp.abs(out - ref))
    assert jnp.allclose(out, ref, atol=1e-4, rtol=1e-4), f"max abs err {max_err}"

    print("KERNEL_OK")
</pallas_src>

<mosaic_0001>
module attributes {stable_mosaic.version = 11 : i64} {
  func.func @_cross_attn_kernel(%arg0: i32, %arg1: memref<1x8x6xf32, #tpu.memory_space<vmem>>, %arg2: memref<7x18xf32, #tpu.memory_space<vmem>>, %arg3: memref<7x128xf32, #tpu.memory_space<vmem>>, %arg4: memref<1x3x128xf32, #tpu.memory_space<vmem>>) attributes {dimension_semantics = [#tpu.dimension_semantics<parallel>], iteration_bounds = array<i64: 1>, scalar_prefetch = 0 : i64, scratch_operands = 0 : i64, tpu.core_type = #tpu.core_type<tc>, window_params = [{transform_indices = @transform_0, window_bounds = array<i64: 1, 8, 6>}, {pipeline_mode = #tpu.pipeline_mode<synchronous>, transform_indices = @transform_1, window_bounds = array<i64: 7, 18>}, {pipeline_mode = #tpu.pipeline_mode<synchronous>, transform_indices = @transform_2, window_bounds = array<i64: 7, 128>}, {transform_indices = @transform_3, window_bounds = array<i64: 1, 3, 128>}]} {
    %c0 = arith.constant 0 : index
    %c0_0 = arith.constant 0 : index
    %c0_1 = arith.constant 0 : index
    %0 = vector.load %arg1[%c0, %c0_0, %c0_1] : memref<1x8x6xf32, #tpu.memory_space<vmem>>, vector<1x8x6xf32>
    %1 = vector.shape_cast %0 : vector<1x8x6xf32> to vector<8x6xf32>
    %c0_2 = arith.constant 0 : index
    %c0_3 = arith.constant 0 : index
    %2 = vector.load %arg2[%c0_2, %c0_3] : memref<7x18xf32, #tpu.memory_space<vmem>>, vector<7x18xf32>
    %c0_4 = arith.constant 0 : index
    %c0_5 = arith.constant 0 : index
    %3 = vector.load %arg3[%c0_4, %c0_5] : memref<7x128xf32, #tpu.memory_space<vmem>>, vector<7x128xf32>
    %4 = vector.extract_strided_slice %2 {offsets = [0, 0], sizes = [6, 18], strides = [1, 1]} : vector<7x18xf32> to vector<6x18xf32>
    %5 = vector.extract_strided_slice %2 {offsets = [6, 0], sizes = [1, 18], strides = [1, 1]} : vector<7x18xf32> to vector<1x18xf32>
    %6 = vector.extract_strided_slice %3 {offsets = [0, 0], sizes = [6, 128], strides = [1, 1]} : vector<7x128xf32> to vector<6x128xf32>
    %7 = vector.extract_strided_slice %3 {offsets = [6, 0], sizes = [1, 128], strides = [1, 1]} : vector<7x128xf32> to vector<1x128xf32>
    %cst = arith.constant dense<0.000000e+00> : vector<8x18xf32>
    %8 = tpu.matmul %1, %4, %cst {dimension_numbers = #tpu.dot_dimension_numbers<[1], [0], [0], [1], [0, 0, 1, 1], [], []>} : vector<8x6xf32>, vector<6x18xf32>, vector<8x18xf32> -> vector<8x18xf32>
    %9 = vector.broadcast %5 : vector<1x18xf32> to vector<8x18xf32>
    %10 = arith.addf %8, %9 : vector<8x18xf32>
    %11 = vector.extract_strided_slice %10 {offsets = [0, 0], sizes = [3, 6], strides = [1, 1]} : vector<8x18xf32> to vector<3x6xf32>
    %12 = vector.extract_strided_slice %10 {offsets = [3, 6], sizes = [5, 6], strides = [1, 1]} : vector<8x18xf32> to vector<5x6xf32>
    %13 = vector.extract_strided_slice %10 {offsets = [3, 12], sizes = [5, 6], strides = [1, 1]} : vector<8x18xf32> to vector<5x6xf32>
    %14 = tpu.iota {dimensions = array<i32: 0>} : vector<6x6xi32>
    %15 = tpu.iota {dimensions = array<i32: 1>} : vector<6x6xi32>
    %cst_6 = arith.constant 0.000000e+00 : f32
    %16 = vector.broadcast %cst_6 : f32 to vector<6x6xf32>
    %c0_i32 = arith.constant 0 : i32
    %17 = vector.broadcast %c0_i32 : i32 to vector<6x6xi32>
    %18 = arith.cmpi sge, %14, %17 : vector<6x6xi32>
    %c3_i32 = arith.constant 3 : i32
    %19 = vector.broadcast %c3_i32 : i32 to vector<6x6xi32>
    %20 = arith.cmpi slt, %14, %19 : vector<6x6xi32>
    %21 = arith.andi %18, %20 : vector<6x6xi1>
    %c0_i32_7 = arith.constant 0 : i32
    %22 = vector.broadcast %c0_i32_7 : i32 to vector<6x6xi32>
    %23 = arith.cmpi sge, %15, %22 : vector<6x6xi32>
    %24 = arith.andi %21, %23 : vector<6x6xi1>
    %c3_i32_8 = arith.constant 3 : i32
    %25 = vector.broadcast %c3_i32_8 : i32 to vector<6x6xi32>
    %26 = arith.cmpi slt, %15, %25 : vector<6x6xi32>
    %27 = arith.andi %24, %26 : vector<6x6xi1>
    %28 = arith.extui %27 : vector<6x6xi1> to vector<6x6xi32>
    %29 = arith.sitofp %28 : vector<6x6xi32> to vector<6x6xf32>
    %30 = arith.addf %16, %29 : vector<6x6xf32>
    %c3_i32_9 = arith.constant 3 : i32
    %31 = vector.broadcast %c3_i32_9 : i32 to vector<6x6xi32>
    %32 = arith.cmpi sge, %14, %31 : vector<6x6xi32>
    %c6_i32 = arith.constant 6 : i32
    %33 = vector.broadcast %c6_i32 : i32 to vector<6x6xi32>
    %34 = arith.cmpi slt, %14, %33 : vector<6x6xi32>
    %35 = arith.andi %32, %34 : vector<6x6xi1>
    %c3_i32_10 = arith.constant 3 : i32
    %36 = vector.broadcast %c3_i32_10 : i32 to vector<6x6xi32>
    %37 = arith.cmpi sge, %15, %36 : vector<6x6xi32>
    %38 = arith.andi %35, %37 : vector<6x6xi1>
    %c6_i32_11 = arith.constant 6 : i32
    %39 = vector.broadcast %c6_i32_11 : i32 to vector<6x6xi32>
    %40 = arith.cmpi slt, %15, %39 : vector<6x6xi32>
    %41 = arith.andi %38, %40 : vector<6x6xi1>
    %42 = arith.extui %41 : vector<6x6xi1> to vector<6x6xi32>
    %43 = arith.sitofp %42 : vector<6x6xi32> to vector<6x6xf32>
    %44 = arith.addf %30, %43 : vector<6x6xf32>
    %45 = tpu.concatenate %11, %11 in 0 : vector<3x6xf32>, vector<3x6xf32> -> vector<6x6xf32>
    %46 = arith.mulf %45, %44 : vector<6x6xf32>
    "tpu.trace_start"() <{level = 10 : i32, message = "qd,kd->qk"}> : () -> ()
    %cst_12 = arith.constant dense<0.000000e+00> : vector<6x5xf32>
    %47 = tpu.matmul %46, %12, %cst_12 {dimension_numbers = #tpu.dot_dimension_numbers<[1], [1], [0], [0], [0, 0, 1, 0], [], []>} : vector<6x6xf32>, vector<5x6xf32>, vector<6x5xf32> -> vector<6x5xf32>
    "tpu.trace_stop"() : () -> ()
    %cst_13 = arith.constant 0.577350259 : f32
    %48 = vector.broadcast %cst_13 : f32 to vector<6x5xf32>
    %49 = arith.mulf %47, %48 : vector<6x5xf32>
    %cst_14 = arith.constant dense<0xFF800000> : vector<6xf32>
    %50 = vector.multi_reduction <maximumf>, %49, %cst_14 [1] : vector<6x5xf32> to vector<6xf32>
    %51 = vector.shape_cast %50 : vector<6xf32> to vector<6x1xf32>
    %52 = vector.broadcast %51 : vector<6x1xf32> to vector<6x5xf32>
    %53 = arith.subf %49, %52 : vector<6x5xf32>
    %54 = math.exp %53 : vector<6x5xf32>
    %cst_15 = arith.constant dense<0.000000e+00> : vector<6xf32>
    %55 = vector.multi_reduction <add>, %54, %cst_15 [1] : vector<6x5xf32> to vector<6xf32>
    %56 = vector.shape_cast %55 : vector<6xf32> to vector<6x1xf32>
    %57 = vector.broadcast %56 : vector<6x1xf32> to vector<6x5xf32>
    %58 = arith.divf %54, %57 : vector<6x5xf32>
    %cst_16 = arith.constant dense<0.000000e+00> : vector<6x6xf32>
    %59 = tpu.matmul %58, %13, %cst_16 {dimension_numbers = #tpu.dot_dimension_numbers<[1], [0], [0], [1], [0, 0, 1, 1], [], []>} : vector<6x5xf32>, vector<5x6xf32>, vector<6x6xf32> -> vector<6x6xf32>
    %60 = arith.mulf %59, %44 : vector<6x6xf32>
    %61 = vector.extract_strided_slice %60 {offsets = [0, 0], sizes = [3, 6], strides = [1, 1]} : vector<6x6xf32> to vector<3x6xf32>
    %62 = vector.extract_strided_slice %60 {offsets = [3, 0], sizes = [3, 6], strides = [1, 1]} : vector<6x6xf32> to vector<3x6xf32>
    %63 = arith.addf %61, %62 : vector<3x6xf32>
    %cst_17 = arith.constant dense<0.000000e+00> : vector<3x128xf32>
    %64 = tpu.matmul %63, %6, %cst_17 {dimension_numbers = #tpu.dot_dimension_numbers<[1], [0], [0], [1], [0, 0, 1, 1], [], []>} : vector<3x6xf32>, vector<6x128xf32>, vector<3x128xf32> -> vector<3x128xf32>
    %65 = vector.broadcast %7 : vector<1x128xf32> to vector<3x128xf32>
    %66 = arith.addf %64, %65 : vector<3x128xf32>
    %c0_18 = arith.constant 0 : index
    %c0_19 = arith.constant 0 : index
    %c0_20 = arith.constant 0 : index
    %67 = vector.load %arg4[%c0_18, %c0_19, %c0_20] : memref<1x3x128xf32, #tpu.memory_space<vmem>>, vector<1x3x128xf32>
    %68 = vector.shape_cast %67 : vector<1x3x128xf32> to vector<3x128xf32>
    %69 = vector.shape_cast %66 : vector<3x128xf32> to vector<1x3x128xf32>
    tpu.vector_store %arg4[%c0_18, %c0_19, %c0_20], %69 {strides = array<i32>} : memref<1x3x128xf32, #tpu.memory_space<vmem>>, vector<1x3x128xf32>,
    return
  }
  func.func @transform_0(%arg0: i32) -> (i32, i32, i32) {
    %c0_i32 = arith.constant 0 : i32
    %c0_i32_0 = arith.constant 0 : i32
    %c0_i32_1 = arith.constant 0 : i32
    return %arg0, %c0_i32, %c0_i32_0 : i32, i32, i32
  }
  func.func @transform_1(%arg0: i32) -> (i32, i32) {
    %c0_i32 = arith.constant 0 : i32
    %c0_i32_0 = arith.constant 0 : i32
    %c0_i32_1 = arith.constant 0 : i32
    return %c0_i32, %c0_i32_0 : i32, i32
  }
  func.func @transform_2(%arg0: i32) -> (i32, i32) {
    %c0_i32 = arith.constant 0 : i32
    %c0_i32_0 = arith.constant 0 : i32
    %c0_i32_1 = arith.constant 0 : i32
    return %c0_i32, %c0_i32_0 : i32, i32
  }
  func.func @transform_3(%arg0: i32) -> (i32, i32, i32) {
    %c0_i32 = arith.constant 0 : i32
    %c0_i32_0 = arith.constant 0 : i32
    %c0_i32_1 = arith.constant 0 : i32
    return %arg0, %c0_i32, %c0_i32_0 : i32, i32, i32
  }
}

</mosaic_0001>

<bundles_post_ra>
// kernel: cross_attention.1
= control target key start
LH: loop header
LB: loop body
LE: loop exit
PB: predicated region body
PF: predicated region fallthrough
CT: control target
= control target key end

     0   :  { %vm22_vm0 = vcmask 1045504   ;;  %vm18_vm1 = vcmask 48128   ;;  %s213_s16 = smov 122   ;;  %v46_v6 = vlaneseq  ;;  %v214_v10 = vmov 0.0   ;;  %s254_s1 = inlined_call_operand.vmem [shape: f32[7,18], index: 1, kind: input, shape index: {}]   ;;  %s255_s0 = inlined_call_operand.vmem [shape: f32[1,8,6], index: 0, kind: input, shape index: {}]   ;;  %s256_s2 = inlined_call_operand.vmem [shape: f32[7,128], index: 2, kind: input, shape index: {}]   ;;  %s257_s3 = inlined_call_operand.vmem [shape: f32[1,3,128], index: 3, kind: output, shape index: {}]  }
   0x1   :  { %v15_v0 = vld [vmem:[%s254_s1] sm:$0x7f]  ;;  %vm73_vm12 = vcmask 1042432   ;;  %vm105_vm13 = vcmask 37888  }
   0x2   :  { %v14_v1 = vld [vmem:[%s255_s0] sm:$0xff]  ;;  %196 = vmatpush.msk.msra.mxu0 %vm22_vm0, %v15_v0  ;;  %v17_v2 = vperm.slane %v15_v0, 6  ;;  %v47_v7 = vshrl.u32 %v46_v6, 7  ;;  %v49_v8 = vand.u32 127, %v46_v6  ;;  %s215_s0 = smov 116  }
   0x3   :  { %197 = vmatmul.msk.f32.vlgmr.msra.gmra.mxu0 %vm18_vm1, %v14_v1  ;;  %v16_v38 = vld [vmem:[%s256_s2] sm:$0x7f] }
   0x4   :  { %vm60_vm2 = vcmp.ge.s32.totalorder %v47_v7, 3  ;;  %vm61_vm3 = vcmp.lt.s32.totalorder %v47_v7, 6  ;;  %vm63_vm5 = vcmp.ge.s32.totalorder %v49_v8, 3  ;;  %vm51_vm6 = vcmp.lt.s32.totalorder %v47_v7, 3  ;;  %204 = vmatpush.msk.msra.mxu3 %vm22_vm0, %v16_v38 }
   0x5   :  { %vm62_vm4 = vmand %vm60_vm2, %vm61_vm3  ;;  %vm55_vm7 = vcmp.lt.s32.totalorder %v49_v8, 3  ;;  %vm65_vm9 = vcmp.lt.s32.totalorder %v49_v8, 6  ;;  %v164_v43 = vperm.slane %v16_v38, 6 }
   0x6   :  { %vm64_vm8 = vmand %vm62_vm4, %vm63_vm5  ;;  %vm136_vm4 = vcmask 1044480   ;;  %vm132_vm5 = vcmask 39936  }
   0x7   :  { %vm56_vm10 = vmand %vm51_vm6, %vm55_vm7 }
   0x8   :  { %vm66_vm11 = vmand %vm64_vm8, %vm65_vm9  ;;  %v198_v11 = vsel %vm56_vm10, 1.0, %v214_v10 }
   0x9   :  { %v199_v12 = vsel %vm66_vm11, 1.0, %v214_v10 }
   0xa   :  { %v69_v13 = vadd.f32 %v199_v12, %v198_v11 }
  0x80   :  { %v43_v3 = vpop.f32.mrf.mxu0 }
  0x81   :  { %v44_v4 = vadd.f32 %v43_v3, %v17_v2 }
  0x83   :  { %v76_v5 = vrot.slane %v44_v4, 3  ;;  %v71_v9 = vrot.slane %v44_v4, 5 }
  0x85   :  { %77 = vrot.lane.b32.xlu0 %v76_v5, %s213_s16  ;;  %v74_v14 = vsel %vm73_vm12, %v44_v4, %v71_v9 }
  0x86   :  { %v75_v16 = vmul.f32 %v74_v14, %v69_v13 }
  0xf7   :  { %v78_v15 = vpop.permute.xlu0 %77 }
  0xf8   :  { %200 = vmatpush.xpose.msk.msra.mxu1 %vm18_vm1, %v78_v15 }
  0xfb   :  { %201 = vmatmul.msk.f32.vlgmr.msra.gmra.mxu1 %vm18_vm1, %v75_v16 }
 0x178   :  { %v101_v17 = vpop.f32.mrf.mxu1 }
 0x179   :  { %v104_v18 = vmul.f32 0.57735026, %v101_v17 }
 0x17b   :  { %v106_v19 = vsel %vm105_vm13, %v104_v18, -inf }
 0x17c   :  { %107 = vmax.xlane.f32.xlu0 %v106_v19 }
 0x1ef   :  { %v108_v20 = vpop.xlane.xlu0 %107 }
 0x1f0   :  { %v109_v21 = vsub.f32 %v104_v18, %v108_v20 }
 0x1f2   :  { %v110_v22 = vmul.f32 1.442695, %v109_v21 }
 0x1f4   :  { %209 = vpow2.f32 %v110_v22 }
 0x1fa   :  { %v210_v23 = vpop.eup %209 }
 0x1fb   :  { %v112_v24 = vsel %vm105_vm13, %v210_v23, 0.0 }
 0x1fc   :  { %113 = vadd.xlane.f32.xlu1 %v112_v24 }
 0x215   :  { %130 = vrot.lane.b32.xlu1 %v76_v5, %s215_s0 }
 0x26f   :  { %v114_v25 = vpop.xlane.xlu1 %113 }
 0x270   :  { %211 = vrcp.f32 %v114_v25  ;;  %v126_v31 = vand.u32 2147483648, %v114_v25  ;;  %vm120_vm15 = vweird.f32 %v114_v25  ;;  %v124_v32 = vand.u32 2147483647, %v114_v25 }
 0x272   :  { %v127_v34 = vor.u32 1.1754944e-38, %v126_v31  ;;  %vm125_vm3 = vcmp.eq.f32.partialorder %v124_v32, 8.507059e+37 }
 0x276   :  { %v212_v26 = vpop.eup %211 }
 0x277   :  { %v116_v27 = vmul.f32 %v212_v26, %v114_v25  ;;  %vm121_vm14 = vweird.f32 %v212_v26 }
 0x278   :  { %vm122_vm2 = vmor %vm120_vm15, %vm121_vm14 }
 0x279   :  { %v117_v28 = vsub.f32 1.0, %v116_v27 }
 0x27b   :  { %v118_v29 = vmul.f32 %v212_v26, %v117_v28 }
 0x27d   :  { %v119_v30 = vadd.f32 %v212_v26, %v118_v29 }
 0x27f   :  { %v123_v33 = vsel %vm122_vm2, %v212_v26, %v119_v30 }
 0x280   :  { %v128_v35 = vsel %vm125_vm3, %v127_v34, %v123_v33 }
 0x281   :  { %v129_v37 = vmul.f32 %v210_v23, %v128_v35 }
 0x287   :  { %v131_v36 = vpop.permute.xlu1 %130 }
 0x288   :  { %202 = vmatpush.msk.msra.mxu2 %vm136_vm4, %v131_v36 }
 0x289   :  { %203 = vmatmul.msk.f32.vlgmr.msra.gmra.mxu2 %vm132_vm5, %v129_v37 }
 0x30c   :  { %v156_v39 = vpop.f32.mrf.mxu2 }
 0x30d   :  { %v159_v40 = vmul.f32 %v156_v39, %v69_v13 }
 0x30f   :  { %v161_v41 = vrot.slane %v159_v40, 3 }
 0x311   :  { %v163_v42 = vadd.f32 %v161_v41, %v159_v40 }
 0x313   :  { %205 = vmatmul.msk.f32.vlgmr.msra.gmra.mxu3 %vm18_vm1, %v163_v42 }
 0x396   :  { %v188_v44 = vpop.f32.mrf.mxu3 }
 0x397   :  { %v189_v45 = vadd.f32 %v188_v44, %v164_v43 }
 0x399   :  { %191 = vst [vmem:[%s257_s3] sm:$0x7] %v189_v45 }

</bundles_post_ra>
